<compile_context>
chip_gen: v6e
topology: v6e:2x2x1
jax: 0.10.0
libtpu: 0.0.40
codegen_flags: <defaults>
</compile_context>

<pallas_src>
import functools

import jax
import jax.numpy as jnp
from jax.experimental import pallas as pl
from jax.experimental.pallas import tpu as pltpu


# ----------------------------------------------------------------------------
# Per-generation VMEM planning
# ----------------------------------------------------------------------------
def _tpu_vmem_capacity_bytes():
    try:
        return int(pltpu.get_tpu_info().vmem_capacity_bytes)
    except Exception:
        return 64 << 20  # conservative fallback (v7x per-TensorCore VMEM)


def _vmem_plan():
    """Return (streaming_budget_bytes, vmem_limit_bytes) for this chip.

    v5e/v6e (128 MiB physical) -> limit 64 MiB, streaming budget 32 MiB
    v7x     ( 64 MiB physical) -> limit 48 MiB, streaming budget 24 MiB
    """
    phys = _tpu_vmem_capacity_bytes()
    limit = min((phys * 3) // 4, 64 << 20)   # headroom for residents/scratch
    budget = limit // 2                      # double-buffered streamed tiles
    return int(budget), int(limit)


def _row_align(itemsize):
    # Sub-32-bit dtypes pack rows along sublanes; keep row tiles aligned to
    # full packed sublanes (avoids masked partial stores, esp. on v5e).
    if itemsize >= 4:
        return 8
    if itemsize == 2:
        return 16
    return 32


def _choose_tiles(n, d, itemsize, n_streamed, budget_bytes, target_rows=1024):
    """Pick (tile_rows, tile_d).

    tile_d is either the full extent d or a multiple of 128 that divides d;
    tile_rows is either the full extent n or a multiple of the sublane packing.
    Streamed tensors are assumed double-buffered by the BlockSpec pipeline.
    """
    align = _row_align(itemsize)

    # Lane (D) tiling: only tile D when full-width tiles of ~target_rows rows
    # would not fit the budget, and only when D is lane-aligned.
    td = d
    full_d_rows = budget_bytes // max(1, 2 * n_streamed * d * itemsize)
    if d % 128 == 0 and full_d_rows < min(n, target_rows):
        for cand in (2048, 1024, 512, 256, 128):
            if d % cand == 0:
                td = cand
                break

    # Batch (row) tiling given td.
    tm = budget_bytes // max(1, 2 * n_streamed * td * itemsize)
    if tm >= n:
        return int(n), int(td)  # full extent: always a legal block shape
    tm = max(align, (tm // align) * align)
    return int(min(tm, n)), int(td)


# ----------------------------------------------------------------------------
# Kernels
# ----------------------------------------------------------------------------
def _actnorm_init_kernel(x_ref, bias_ref, log_scale_ref, sum_ref, sq_ref,
                         *, n_rows, tile_rows, has_partial_tile):
    # Grid axes: (D blocks [parallel], batch blocks [arbitrary/reduction]).
    # x_ref: (TM, TD); bias_ref / log_scale_ref / sum_ref / sq_ref: (1, TD) f32
    i = pl.program_id(1)
    last = pl.num_programs(1) - 1

    @pl.when(i == 0)
    def _():
        sum_ref[...] = jnp.zeros_like(sum_ref)
        sq_ref[...] = jnp.zeros_like(sq_ref)

    x = x_ref[...].astype(jnp.float32)  # (TM, TD)

    if not has_partial_tile:
        # No partial tiles exist: never pay for the mask (static branch).
        sum_ref[...] += jnp.sum(x, axis=0, keepdims=True)
        sq_ref[...] += jnp.sum(x * x, axis=0, keepdims=True)
    else:
        # Full tiles: unmasked accumulation (hot path).
        @pl.when(i < last)
        def _():
            sum_ref[...] += jnp.sum(x, axis=0, keepdims=True)
            sq_ref[...] += jnp.sum(x * x, axis=0, keepdims=True)

        # Final, partial tile: mask out-of-range rows (their VMEM contents are
        # undefined and must not pollute the reduction).
        @pl.when(i == last)
        def _():
            row = i * tile_rows + jax.lax.broadcasted_iota(jnp.int32, x.shape, 0)
            xv = jnp.where(row < n_rows, x, 0.0)
            sum_ref[...] += jnp.sum(xv, axis=0, keepdims=True)
            sq_ref[...] += jnp.sum(xv * xv, axis=0, keepdims=True)

    @pl.when(i == last)
    def _():
        n = jnp.float32(n_rows)
        mean = sum_ref[...] / n
        # torch.std defaults to unbiased (ddof = 1).
        # TODO(synk): n_rows == 1 divides by zero (NaN/Inf), same as torch.std;
        # and the single-pass E[x^2]-mean^2 formula can cancel for |mean|>>std.
        var = (sq_ref[...] - n * mean * mean) / (n - 1.0)
        var = jnp.maximum(var, 0.0)  # guard tiny negatives from cancellation
        std = jnp.sqrt(var)
        bias_ref[...] = -mean
        # log(1 / (std + 1e-6)) == -log(std + 1e-6)
        log_scale_ref[...] = -jnp.log(std + 1e-6)


def _actnorm_apply_kernel(x_ref, bias_ref, scale_ref, y_ref):
    # x_ref/y_ref: (TM, TD); bias_ref/scale_ref: (1, TD) f32 (resident per D block)
    x = x_ref[...].astype(jnp.float32)
    y_ref[...] = ((x + bias_ref[...]) * scale_ref[...]).astype(y_ref.dtype)


# ----------------------------------------------------------------------------
# Wrappers
# ----------------------------------------------------------------------------
def actnorm_init_params(x, *, tile_rows=None, tile_d=None):
    """Compute (bias, log_scale), each of shape (D,), from x of shape (N, D)."""
    n, d = x.shape
    budget, vmem_limit = _vmem_plan()
    itemsize = jnp.dtype(x.dtype).itemsize
    tm, td = _choose_tiles(n, d, itemsize, n_streamed=1, budget_bytes=budget)
    if tile_rows is not None:
        tm = int(tile_rows)
    if tile_d is not None:
        td = int(tile_d)

    n_row_blocks = pl.cdiv(n, tm)
    n_d_blocks = pl.cdiv(d, td)
    has_partial = (n % tm) != 0

    kernel = functools.partial(
        _actnorm_init_kernel,
        n_rows=n, tile_rows=tm, has_partial_tile=has_partial)

    bias2d, log_scale2d = pl.pallas_call(
        kernel,
        out_shape=(
            jax.ShapeDtypeStruct((1, d), jnp.float32),
            jax.ShapeDtypeStruct((1, d), jnp.float32),
        ),
        grid=(n_d_blocks, n_row_blocks),
        in_specs=[pl.BlockSpec((tm, td), lambda j, i: (i, j))],
        out_specs=(
            pl.BlockSpec((1, td), lambda j, i: (0, j)),
            pl.BlockSpec((1, td), lambda j, i: (0, j)),
        ),
        scratch_shapes=[
            pltpu.VMEM((1, td), jnp.float32),
            pltpu.VMEM((1, td), jnp.float32),
        ],
        compiler_params=pltpu.CompilerParams(
            # D axis shards across TensorCores (v7x megacore); batch axis is
            # the reduction and stays "arbitrary" (and last).
            dimension_semantics=("parallel", "arbitrary"),
            vmem_limit_bytes=vmem_limit),
    )(x)
    return bias2d[0], log_scale2d[0]


def actnorm_apply(x, bias, log_scale, *, tile_rows=None, tile_d=None):
    """y = (x + bias) * exp(log_scale), ld = sum(log_scale)."""
    n, d = x.shape
    budget, vmem_limit = _vmem_plan()
    itemsize = jnp.dtype(x.dtype).itemsize
    # x tile + y tile are streamed (double-buffered); bias/scale stay resident.
    tm, td = _choose_tiles(n, d, itemsize, n_streamed=2, budget_bytes=budget)
    if tile_rows is not None:
        tm = int(tile_rows)
    if tile_d is not None:
        td = int(tile_d)

    bias2d = bias.reshape(1, d).astype(jnp.float32)
    # Precompute scale once in the wrapper; kernel stays a fused add-mul.
    scale2d = jnp.exp(log_scale).reshape(1, d).astype(jnp.float32)

    grid = (pl.cdiv(n, tm), pl.cdiv(d, td))
    y = pl.pallas_call(
        _actnorm_apply_kernel,
        out_shape=jax.ShapeDtypeStruct((n, d), x.dtype),
        grid=grid,
        in_specs=[
            pl.BlockSpec((tm, td), lambda i, j: (i, j)),   # x: streamed
            pl.BlockSpec((1, td), lambda i, j: (0, j)),    # bias: resident
            pl.BlockSpec((1, td), lambda i, j: (0, j)),    # scale: resident
        ],
        out_specs=pl.BlockSpec((tm, td), lambda i, j: (i, j)),
        compiler_params=pltpu.CompilerParams(
            dimension_semantics=("parallel", "parallel"),  # megacore-shardable
            vmem_limit_bytes=vmem_limit),
    )(x, bias2d, scale2d)

    # ld is x-independent: keep it out of the tiled kernel (no per-step
    # cross-lane reduce / masked 1-element store).
    ld = jnp.sum(log_scale.astype(jnp.float32))
    return y, ld


class ActNorm:
    """JAX/Pallas port of the PyTorch _ActNorm module (forward pass)."""

    def __init__(self, dim):
        # Matches nn.Parameter(torch.zeros(dim)).
        self.bias = jnp.zeros((dim,), dtype=jnp.float32)
        self.log_scale = jnp.zeros((dim,), dtype=jnp.float32)
        self.initialised = False

    def forward(self, x):
        if not self.initialised:
            self.bias, self.log_scale = actnorm_init_params(x)
            self.initialised = True
        return actnorm_apply(x, self.bias, self.log_scale)

    def inverse(self, y):
        # Elementwise glue; hot path already covered by the apply kernel.
        return y * jnp.exp(-self.log_scale) - self.bias


# ----------------------------------------------------------------------------
# Main
# ----------------------------------------------------------------------------
if __name__ == "__main__":
    key = jax.random.PRNGKey(0)
    k0, k1 = jax.random.split(key)

    def reference(x):
        mean = x.mean(axis=0)
        std = x.std(axis=0, ddof=1)
        bias = -mean
        log_scale = jnp.log(1.0 / (std + 1e-6))
        y = (x + bias) * jnp.exp(log_scale)
        return y, log_scale.sum()

    # 1) Default tile plan (small, lane-aligned input); exercises the
    #    no-masking static branch and the module's lazy init.
    N, D = 8, 128
    x = jax.random.normal(k0, (N, D), dtype=jnp.float32) * 2.0 + 0.5
    model = ActNorm(D)
    y, ld = model.forward(x)
    y = jax.block_until_ready(y)
    ld = jax.block_until_ready(ld)
    y_ref, ld_ref = reference(x)
    assert jnp.allclose(y, y_ref, atol=1e-4, rtol=1e-4)
    assert jnp.allclose(ld, ld_ref, atol=1e-4, rtol=1e-4)

    # 2) Forced small tiles: exercises the partial-last-batch-tile masking
    #    path and the lane (D) tiling path at small shapes.
    N2, D2 = 20, 256
    x2 = jax.random.normal(k1, (N2, D2), dtype=jnp.float32) - 1.5
    bias2, log_scale2 = actnorm_init_params(x2, tile_rows=8, tile_d=128)
    y2, ld2 = actnorm_apply(x2, bias2, log_scale2, tile_rows=8, tile_d=128)
    y2 = jax.block_until_ready(y2)
    ld2 = jax.block_until_ready(ld2)
    y2_ref, ld2_ref = reference(x2)
    assert jnp.allclose(y2, y2_ref, atol=1e-4, rtol=1e-4)
    assert jnp.allclose(ld2, ld2_ref, atol=1e-4, rtol=1e-4)

    print("KERNEL_OK")
</pallas_src>

<mosaic_0001>
module attributes {stable_mosaic.version = 11 : i64} {
  func.func @_actnorm_init_kernel(%arg0: i32, %arg1: i32, %arg2: memref<8x128xf32, #tpu.memory_space<vmem>>, %arg3: memref<1x128xf32, #tpu.memory_space<vmem>>, %arg4: memref<1x128xf32, #tpu.memory_space<vmem>>, %arg5: memref<1x128xf32, #tpu.memory_space<vmem>>, %arg6: memref<1x128xf32, #tpu.memory_space<vmem>>) attributes {dimension_semantics = [#tpu.dimension_semantics<parallel>, #tpu.dimension_semantics<arbitrary>], iteration_bounds = array<i64: 1, 1>, scalar_prefetch = 0 : i64, scratch_operands = 2 : i64, tpu.core_type = #tpu.core_type<tc>, window_params = [{transform_indices = @transform_0, window_bounds = array<i64: 8, 128>}, {transform_indices = @transform_1, window_bounds = array<i64: 1, 128>}, {transform_indices = @transform_2, window_bounds = array<i64: 1, 128>}]} {
    %c0_i32 = arith.constant 0 : i32
    %0 = arith.cmpi eq, %arg1, %c0_i32 : i32
    %1 = arith.extui %0 : i1 to i32
    %c0_i32_0 = arith.constant 0 : i32
    %2 = arith.cmpi ne, %1, %c0_i32_0 : i32
    scf.if %2 {
      %cst_13 = arith.constant 0.000000e+00 : f32
      %18 = vector.broadcast %cst_13 : f32 to vector<1x128xf32>
      %c0_14 = arith.constant 0 : index
      %c0_15 = arith.constant 0 : index
      %19 = vector.load %arg5[%c0_14, %c0_15] : memref<1x128xf32, #tpu.memory_space<vmem>>, vector<1x128xf32>
      tpu.vector_store %arg5[%c0_14, %c0_15], %18 {strides = array<i32>} : memref<1x128xf32, #tpu.memory_space<vmem>>, vector<1x128xf32>,
      %cst_16 = arith.constant 0.000000e+00 : f32
      %20 = vector.broadcast %cst_16 : f32 to vector<1x128xf32>
      %c0_17 = arith.constant 0 : index
      %c0_18 = arith.constant 0 : index
      %21 = vector.load %arg6[%c0_17, %c0_18] : memref<1x128xf32, #tpu.memory_space<vmem>>, vector<1x128xf32>
      tpu.vector_store %arg6[%c0_17, %c0_18], %20 {strides = array<i32>} : memref<1x128xf32, #tpu.memory_space<vmem>>, vector<1x128xf32>,
    } else {
    }
    %c0 = arith.constant 0 : index
    %c0_1 = arith.constant 0 : index
    %3 = vector.load %arg2[%c0, %c0_1] : memref<8x128xf32, #tpu.memory_space<vmem>>, vector<8x128xf32>
    %c0_2 = arith.constant 0 : index
    %c0_3 = arith.constant 0 : index
    %4 = vector.load %arg5[%c0_2, %c0_3] : memref<1x128xf32, #tpu.memory_space<vmem>>, vector<1x128xf32>
    %cst = arith.constant dense<0.000000e+00> : vector<128xf32>
    %5 = vector.multi_reduction <add>, %3, %cst [0] : vector<8x128xf32> to vector<128xf32>
    %6 = vector.shape_cast %5 : vector<128xf32> to vector<1x128xf32>
    %7 = arith.addf %4, %6 : vector<1x128xf32>
    %c0_4 = arith.constant 0 : index
    %c0_5 = arith.constant 0 : index
    %8 = vector.load %arg5[%c0_4, %c0_5] : memref<1x128xf32, #tpu.memory_space<vmem>>, vector<1x128xf32>
    tpu.vector_store %arg5[%c0_4, %c0_5], %7 {strides = array<i32>} : memref<1x128xf32, #tpu.memory_space<vmem>>, vector<1x128xf32>,
    %c0_6 = arith.constant 0 : index
    %c0_7 = arith.constant 0 : index
    %9 = vector.load %arg6[%c0_6, %c0_7] : memref<1x128xf32, #tpu.memory_space<vmem>>, vector<1x128xf32>
    %10 = arith.mulf %3, %3 : vector<8x128xf32>
    %cst_8 = arith.constant dense<0.000000e+00> : vector<128xf32>
    %11 = vector.multi_reduction <add>, %10, %cst_8 [0] : vector<8x128xf32> to vector<128xf32>
    %12 = vector.shape_cast %11 : vector<128xf32> to vector<1x128xf32>
    %13 = arith.addf %9, %12 : vector<1x128xf32>
    %c0_9 = arith.constant 0 : index
    %c0_10 = arith.constant 0 : index
    %14 = vector.load %arg6[%c0_9, %c0_10] : memref<1x128xf32, #tpu.memory_space<vmem>>, vector<1x128xf32>
    tpu.vector_store %arg6[%c0_9, %c0_10], %13 {strides = array<i32>} : memref<1x128xf32, #tpu.memory_space<vmem>>, vector<1x128xf32>,
    %c0_i32_11 = arith.constant 0 : i32
    %15 = arith.cmpi eq, %arg1, %c0_i32_11 : i32
    %16 = arith.extui %15 : i1 to i32
    %c0_i32_12 = arith.constant 0 : i32
    %17 = arith.cmpi ne, %16, %c0_i32_12 : i32
    scf.if %17 {
      %c0_13 = arith.constant 0 : index
      %c0_14 = arith.constant 0 : index
      %18 = vector.load %arg5[%c0_13, %c0_14] : memref<1x128xf32, #tpu.memory_space<vmem>>, vector<1x128xf32>
      %cst_15 = arith.constant 8.000000e+00 : f32
      %19 = vector.broadcast %cst_15 : f32 to vector<1x128xf32>
      %20 = arith.divf %18, %19 : vector<1x128xf32>
      %c0_16 = arith.constant 0 : index
      %c0_17 = arith.constant 0 : index
      %21 = vector.load %arg6[%c0_16, %c0_17] : memref<1x128xf32, #tpu.memory_space<vmem>>, vector<1x128xf32>
      %cst_18 = arith.constant 8.000000e+00 : f32
      %22 = vector.broadcast %cst_18 : f32 to vector<1x128xf32>
      %23 = arith.mulf %22, %20 : vector<1x128xf32>
      %24 = arith.mulf %23, %20 : vector<1x128xf32>
      %25 = arith.subf %21, %24 : vector<1x128xf32>
      %cst_19 = arith.constant 8.000000e+00 : f32
      %cst_20 = arith.constant 1.000000e+00 : f32
      %26 = arith.subf %cst_19, %cst_20 : f32
      %27 = vector.broadcast %26 : f32 to vector<1x128xf32>
      %28 = arith.divf %25, %27 : vector<1x128xf32>
      %cst_21 = arith.constant 0.000000e+00 : f32
      %29 = vector.broadcast %cst_21 : f32 to vector<1x128xf32>
      %30 = arith.maximumf %28, %29 : vector<1x128xf32>
      %31 = math.sqrt %30 : vector<1x128xf32>
      %cst_22 = arith.constant 0.000000e+00 : f32
      %32 = vector.broadcast %cst_22 : f32 to vector<1x128xf32>
      %33 = arith.subf %32, %20 : vector<1x128xf32>
      %c0_23 = arith.constant 0 : index
      %c0_24 = arith.constant 0 : index
      %34 = vector.load %arg3[%c0_23, %c0_24] : memref<1x128xf32, #tpu.memory_space<vmem>>, vector<1x128xf32>
      tpu.vector_store %arg3[%c0_23, %c0_24], %33 {strides = array<i32>} : memref<1x128xf32, #tpu.memory_space<vmem>>, vector<1x128xf32>,
      %cst_25 = arith.constant 9.99999997E-7 : f32
      %35 = vector.broadcast %cst_25 : f32 to vector<1x128xf32>
      %36 = arith.addf %31, %35 : vector<1x128xf32>
      %37 = math.log %36 : vector<1x128xf32>
      %cst_26 = arith.constant 0.000000e+00 : f32
      %38 = vector.broadcast %cst_26 : f32 to vector<1x128xf32>
      %39 = arith.subf %38, %37 : vector<1x128xf32>
      %c0_27 = arith.constant 0 : index
      %c0_28 = arith.constant 0 : index
      %40 = vector.load %arg4[%c0_27, %c0_28] : memref<1x128xf32, #tpu.memory_space<vmem>>, vector<1x128xf32>
      tpu.vector_store %arg4[%c0_27, %c0_28], %39 {strides = array<i32>} : memref<1x128xf32, #tpu.memory_space<vmem>>, vector<1x128xf32>,
    } else {
    }
    return
  }
  func.func @transform_0(%arg0: i32, %arg1: i32) -> (i32, i32) {
    %c0_i32 = arith.constant 0 : i32
    return %arg1, %arg0 : i32, i32
  }
  func.func @transform_1(%arg0: i32, %arg1: i32) -> (i32, i32) {
    %c0_i32 = arith.constant 0 : i32
    %c0_i32_0 = arith.constant 0 : i32
    return %c0_i32, %arg0 : i32, i32
  }
  func.func @transform_2(%arg0: i32, %arg1: i32) -> (i32, i32) {
    %c0_i32 = arith.constant 0 : i32
    %c0_i32_0 = arith.constant 0 : i32
    return %c0_i32, %arg0 : i32, i32
  }
}

</mosaic_0001>

<bundles_post_ra>
// kernel: tpu_custom_call.1
= control target key start
LH: loop header
LB: loop body
LE: loop exit
PB: predicated region body
PF: predicated region fallthrough
CT: control target
= control target key end

     0   :  { %8 = vsyncpa [#allocation5], 0  ;;  %s208_s0 = inlined_call_operand.hbm [shape: f32[8,128], index: 0, kind: input, shape index: {}]   ;;  %s209_s1 = inlined_call_operand.hbm [shape: f32[1,128], index: 1, kind: output, shape index: {0}]   ;;  %s210_s2 = inlined_call_operand.hbm [shape: f32[1,128], index: 2, kind: output, shape index: {1}]  }
   0x1   :  { %9 = vsyncpa [#allocation6], 0 }
   0x2   :  { %10 = vsyncpa [#allocation9], 0  ;;  %s180_s9 = smov [#allocation4]  }
   0x3   :  { %s17_s10 = sshll.u32 %s180_s9, 4  ;;  %s18_s10 = int_to_ptr.vmem [resolvable:$true] %s17_s10 }
   0x4   :  { %s122_s11 = scalar_lea.vmem %s18_s10, 128  ;;  %p127_p1 = scmp.lt.s32.totalorder %s18_s10, %s18_s10 }
   0x5   :  { %p123_p0 = scmp.ne.s32.totalorder %s18_s10, %s122_s11  ;;  %p128_p2 = scmp.lt.s32.totalorder %s122_s11, %s122_s11 }
   0x7   :  { %p129_p3 = por %p128_p2, %p127_p1 }
   0x9   :  { %p130_p4 = pnand %p129_p3, %p123_p0 }
   0xb   :  { %133 = shalt.err (!%p130_p4)
}
   0xc   :  { %20 = dma.hbm_to_vmem [thread:$0]  %s208_s0, 128, %s18_s10, [#allocation5]  }
   0xd   :  { %174 = dma.done.wait [#allocation5], 128  }
   0xe   :  { %175 = vsyncadd [#allocation5], 4294967168  ;;  %v181_v0 = vmov 0.0   ;;  %v30_v1 = vld [vmem:[#allocation4] sm:$0xff]  ;;  %s182_s0 = smov [#allocation7]  }
   0xf   :  { %28 = vst [vmem:[#allocation2] sm:$0x1] %v181_v0  ;;  %29 = vst [vmem:[#allocation3] sm:$0x1] %v181_v0  ;;  %v32_v2 = vrot.slane %v30_v1, 4  ;;  %v41_v3 = vmul.f32 %v30_v1, %v30_v1  ;;  %s83_s14 = sshll.u32 %s182_s0, 4  ;;  %s84_s14 = int_to_ptr.vmem [resolvable:$true] %s83_s14 }
  0x10   :  { %s134_s15 = scalar_lea.vmem %s84_s14, 16  ;;  %s138_s16 = scalar_lea.vmem %s84_s14, 32 }
  0x11   :  { %v33_v4 = vadd.f32 %v32_v2, %v30_v1  ;;  %v42_v5 = vrot.slane %v41_v3, 4  ;;  %p135_p5 = scmp.ne.s32.totalorder %s84_s14, %s134_s15  ;;  %p139_p6 = scmp.lt.s32.totalorder %s84_s14, %s84_s14 }
  0x12   :  { %p140_p7 = scmp.lt.s32.totalorder %s138_s16, %s134_s15 }
  0x13   :  { %v34_v6 = vrot.slane %v33_v4, 2  ;;  %v43_v7 = vadd.f32 %v42_v5, %v41_v3 }
  0x14   :  { %p141_p8 = por %p140_p7, %p139_p6 }
  0x15   :  { %v35_v8 = vadd.f32 %v34_v6, %v33_v4  ;;  %v44_v9 = vrot.slane %v43_v7, 2 }
  0x16   :  { %v31_v12 = vld [vmem:[#allocation2] sm:$0x1]  ;;  %v40_v15 = vld [vmem:[#allocation3] sm:$0x1]  ;;  %p142_p9 = pnand %p141_p8, %p135_p5 }
  0x17   :  { %v36_v10 = vrot.slane %v35_v8, 1  ;;  %v45_v11 = vadd.f32 %v44_v9, %v43_v7 }
  0x19   :  { %v37_v13 = vadd.f32 %v36_v10, %v35_v8  ;;  %v46_v14 = vrot.slane %v45_v11, 1 }
  0x1b   :  { %v38_v16 = vadd.f32 %v37_v13, %v31_v12  ;;  %v47_v17 = vadd.f32 %v46_v14, %v45_v11 }
  0x1d   :  { %39 = vst [vmem:[#allocation2] sm:$0x1] %v38_v16  ;;  %v48_v18 = vadd.f32 %v47_v17, %v40_v15 }
  0x1f   :  { %49 = vst [vmem:[#allocation3] sm:$0x1] %v48_v18 }
  0x24   :  { %v53_v19 = vld [vmem:[#allocation2] sm:$0x1] }
  0x25   :  { %v55_v20 = vmul.f32 0.125, %v53_v19 }
  0x26   :  { %v56_v23 = vld [vmem:[#allocation3] sm:$0x1] }
  0x27   :  { %v57_v21 = vmul.f32 8.0, %v55_v20  ;;  %v70_v22 = vsub.f32 0.0, %v55_v20 }
  0x29   :  { %v58_v24 = vmul.f32 %v57_v21, %v55_v20  ;;  %71 = vst [vmem:[#allocation7] sm:$0x1] %v70_v22 }
  0x2a   :  { %145 = shalt.err (!%p142_p9)
}
  0x2b   :  { %86 = dma.vmem_to_hbm [thread:$0]  %s84_s14, 16, %s209_s1, [#allocation6]   ;;  %v59_v25 = vsub.f32 %v56_v23, %v58_v24 }
  0x2c   :  { %s183_s19 = smov [#allocation8]  }
  0x2d   :  { %v61_v26 = vmul.f32 0.14285715, %v59_v25  ;;  %s93_s20 = sshll.u32 %s183_s19, 4  ;;  %s94_s20 = int_to_ptr.vmem [resolvable:$true] %s93_s20 }
  0x2e   :  { %s154_s1 = scalar_lea.vmem %s94_s20, 16  ;;  %s158_s21 = scalar_lea.vmem %s94_s20, 32 }
  0x2f   :  { %v62_v27 = vmax.f32 %v61_v26, 0.0  ;;  %p155_p10 = scmp.ne.s32.totalorder %s94_s20, %s154_s1  ;;  %p159_p11 = scmp.lt.s32.totalorder %s94_s20, %s94_s20 }
  0x30   :  { %p160_p12 = scmp.lt.s32.totalorder %s158_s21, %s154_s1 }
  0x31   :  { %110 = vrsqrt.f32 %v62_v27  ;;  %vm65_vm0 = vcmp.eq.f32.partialorder %v62_v27, inf  ;;  %v68_v30 = vand.u32 2147483648, %v62_v27  ;;  %vm67_vm1 = vcmp.eq.f32.partialorder %v62_v27, 0.0 }
  0x32   :  { %p161_p13 = por %p160_p12, %p159_p11 }
  0x34   :  { %p162_p0 = pnand %p161_p13, %p155_p10 }
  0x3e   :  { %v111_v28 = vpop.eup %110 }
  0x3f   :  { %v64_v29 = vmul.f32 %v111_v28, %v62_v27 }
  0x41   :  { %v66_v31 = vsel %vm65_vm0, %v62_v27, %v64_v29 }
  0x42   :  { %v69_v32 = vsel %vm67_vm1, %v68_v30, %v66_v31 }
  0x43   :  { %v72_v33 = vadd.f32 1e-06, %v69_v32 }
  0x45   :  { %112 = vlog2.f32 %v72_v33 }
  0x52   :  { %v113_v34 = vpop.eup %112 }
  0x53   :  { %v74_v35 = vmul.f32 0.6931472, %v113_v34 }
  0x55   :  { %v75_v36 = vsub.f32 0.0, %v74_v35 }
  0x57   :  { %76 = vst [vmem:[#allocation8] sm:$0x1] %v75_v36 }
  0x58   :  { %165 = shalt.err (!%p162_p0)
}
  0x59   :  { %96 = dma.vmem_to_hbm [thread:$0]  %s94_s20, 16, %s210_s2, [#allocation9]  }
  0x5a   :  { %176 = dma.done.wait [#allocation6], 16  }
  0x5b   :  { %177 = vsyncadd [#allocation6], 4294967280 }
  0x5c   :  { %178 = dma.done.wait [#allocation9], 16  }
  0x5d   :  { %179 = vsyncadd [#allocation9], 4294967280 }
  0x5e   :  { %103 = vsyncpa [#allocation5], 1 }
  0x5f   :  { %104 = vsyncpa [#allocation6], 1 }
  0x60   :  { %105 = vsyncpa [#allocation9], 1 }

</bundles_post_ra>
